<compile_context>
chip_gen: v7x
topology: tpu7x:2x2x1
jax: 0.10.0
libtpu: 0.0.40
codegen_flags: <defaults>
</compile_context>

<pallas_src>
import functools

import jax
import jax.numpy as jnp
from jax.experimental import pallas as pl
from jax.experimental.pallas import tpu as pltpu


# ---------------------------------------------------------------------------
# Kernels
# ---------------------------------------------------------------------------

def _attn_flat_kernel(x_ref, proj_ref, expand_ref, fold_ref, b_ref, o_ref):
    """Lane-dense path: x viewed as (bt, T*D).

    x_ref      (bt, T*D)  VMEM  flattened input slab (lane-dense)
    proj_ref   (T*D, T)   VMEM  proj[t*D+d, t'] = w[d] * (t == t')
    expand_ref (T, T*D)   VMEM  expand[t', t*D+d] = (t == t')
    fold_ref   (T*D, D)   VMEM  fold[t*D+d, d'] = (d == d')
    b_ref      (1, 1)     SMEM  Linear bias (scalar)
    o_ref      (bt, D)    VMEM  pooled output block
    """
    x = x_ref[...].astype(jnp.float32)                      # (bt, T*D)
    bias = b_ref[0, 0]

    # score[b, t] = tanh(sum_d x[b,t,d] * w[d] + bias): one MXU matmul on the
    # lane-dense slab instead of a lane-sparse VPU multiply + XLU reduce.
    s = jnp.tanh(
        jnp.dot(x, proj_ref[...].astype(jnp.float32),
                preferred_element_type=jnp.float32) + bias)  # (bt, T)

    # softmax over the sequence axis (PyTorch dim=1); exact divide.
    m = jnp.max(s, axis=-1, keepdims=True)
    e = jnp.exp(s - m)
    alpha = e / jnp.sum(e, axis=-1, keepdims=True)           # (bt, T)

    # Broadcast alpha[b, t] across its D-segment of the lane axis (MXU), one
    # dense VPU multiply, then an MXU segment-fold back to (bt, D).
    alpha_lanes = jnp.dot(alpha, expand_ref[...].astype(jnp.float32),
                          preferred_element_type=jnp.float32)  # (bt, T*D)
    o_ref[...] = jnp.dot(x * alpha_lanes, fold_ref[...].astype(jnp.float32),
                         preferred_element_type=jnp.float32).astype(o_ref.dtype)


def _attn_kernel_3d(x_ref, w_ref, b_ref, o_ref):
    """General path (used when D is already a multiple of 128, when B < 8, or
    when T*D is too large for the flat-path constant matrices)."""
    x = x_ref[...].astype(jnp.float32)                       # (bt, T, D)
    w = w_ref[...].astype(jnp.float32)                       # (1, D) -> broadcast
    bias = b_ref[0, 0]

    s = jnp.tanh(jnp.sum(x * w, axis=-1, keepdims=True) + bias)   # (bt, T, 1)
    m = jnp.max(s, axis=1, keepdims=True)
    e = jnp.exp(s - m)
    alpha = e / jnp.sum(e, axis=1, keepdims=True)                  # exact divide
    o_ref[...] = jnp.sum(x * alpha, axis=1).astype(o_ref.dtype)


# ---------------------------------------------------------------------------
# Wrapper / tiling policy
# ---------------------------------------------------------------------------

def _vmem_budget():
    """(vmem_limit_bytes, per-step input-slab budget in bytes), per generation."""
    try:
        cap = int(getattr(pltpu.get_tpu_info(), "vmem_capacity_bytes", 64 << 20))
    except Exception:                      # be robust if the query is unavailable
        cap = 64 << 20                     # conservative (v7x-sized) default
    # v5e/v6e (128 MiB physical) -> 64 MiB limit; v7x (64 MiB) -> 32 MiB limit.
    vmem_limit = min(max(cap // 2, 32 << 20), 96 << 20)
    # Budget: 2x slab (double-buffered input) + ~2x slab temporaries + margin.
    slab = vmem_limit // 5
    return vmem_limit, slab


def _choose_batch_tile(B, row_bytes, slab_budget):
    # Whole batch fits one slab -> single grid step; no forced split on
    # single-TensorCore chips (it would only add ~0.35us/step overhead).
    if B <= 8 or B * row_bytes <= slab_budget:
        return B
    bt = max(8, (slab_budget // row_bytes) // 8 * 8)
    n_steps = pl.cdiv(B, bt)
    # v7x megacore: prefer an even step count so both TensorCores stay busy on
    # the "parallel" grid axis; costs at most one extra cheap step elsewhere
    # and only when we are already multi-step.
    if n_steps > 1 and n_steps % 2 == 1:
        bt_even = max(8, ((pl.cdiv(B, n_steps + 1) + 7) // 8) * 8)
        if pl.cdiv(B, bt_even) % 2 == 0:
            bt = bt_even
    return bt


@functools.partial(jax.jit, static_argnames=("bt",))
def attention_layer(x, w, b, *, bt=None):
    """x: (B, T, D); w: (1, D); b: (1,)  ->  (B, D).  Matches AttentionLayer."""
    B, T, D = x.shape
    vmem_limit, slab_budget = _vmem_budget()
    row_bytes = T * D * x.dtype.itemsize

    if bt is None:
        bt = _choose_batch_tile(B, row_bytes, slab_budget)

    # Lane-dense flattened path: worthwhile when D under-fills the 128-lane
    # vregs and the constant matrices stay tiny.  Its matmul blocks want
    # multiple-of-8 row counts (ragged tails become a partial last block).
    const_bytes = (T * D) * (2 * T + D) * x.dtype.itemsize
    use_flat = (D % 128 != 0) and (const_bytes <= (4 << 20)) and (B >= 8)
    if use_flat and bt % 8 != 0:
        bt = max(8, (bt // 8) * 8)

    n_steps = pl.cdiv(B, bt)

    compiler_params = pltpu.CompilerParams(
        dimension_semantics=("parallel",),
        vmem_limit_bytes=vmem_limit,
    )
    b2 = b.reshape(1, 1).astype(jnp.float32)
    bias_spec = pl.BlockSpec((1, 1), lambda i: (0, 0),
                             memory_space=pltpu.MemorySpace.SMEM)
    out_shape = jax.ShapeDtypeStruct((B, D), x.dtype)
    out_spec = pl.BlockSpec((bt, D), lambda i: (i, 0))

    if use_flat:
        TD = T * D
        x2 = x.reshape(B, TD)                          # free contiguous reshape
        eye_t = jnp.eye(T, dtype=x.dtype)
        w_row = w.reshape(-1).astype(x.dtype)          # (D,)
        proj = (eye_t[:, None, :] * w_row[None, :, None]).reshape(TD, T)
        expand = jnp.repeat(eye_t, D, axis=1)                       # (T, TD)
        fold = jnp.tile(jnp.eye(D, dtype=x.dtype), (T, 1))          # (TD, D)
        return pl.pallas_call(
            _attn_flat_kernel,
            out_shape=out_shape,
            grid_spec=pltpu.PrefetchScalarGridSpec(
                num_scalar_prefetch=0,
                grid=(n_steps,),
                in_specs=[
                    pl.BlockSpec((bt, TD), lambda i: (i, 0)),
                    pl.BlockSpec((TD, T), lambda i: (0, 0)),
                    pl.BlockSpec((T, TD), lambda i: (0, 0)),
                    pl.BlockSpec((TD, D), lambda i: (0, 0)),
                    bias_spec,
                ],
                out_specs=out_spec,
            ),
            compiler_params=compiler_params,
        )(x2, proj, expand, fold, b2)

    # General 3-D path.
    return pl.pallas_call(
        _attn_kernel_3d,
        out_shape=out_shape,
        grid_spec=pltpu.PrefetchScalarGridSpec(
            num_scalar_prefetch=0,
            grid=(n_steps,),
            in_specs=[
                pl.BlockSpec((bt, T, D), lambda i: (i, 0, 0)),
                pl.BlockSpec((1, D), lambda i: (0, 0)),
                bias_spec,
            ],
            out_specs=out_spec,
        ),
        compiler_params=compiler_params,
    )(x, w.astype(x.dtype), b2)


def attention_layer_ref(x, w, b):
    """Pure-JAX reference matching the PyTorch module (exact f32 VPU math)."""
    score = jnp.tanh(jnp.sum(x * w.reshape(1, 1, -1), axis=-1) + b[0])   # (B, T)
    weights = jax.nn.softmax(score, axis=1)[..., None]                   # (B, T, 1)
    return jnp.sum(x * weights, axis=1)                                  # (B, D)


if __name__ == "__main__":
    key = jax.random.PRNGKey(0)
    kx, kw, kb = jax.random.split(key, 3)

    T, D = 8, 32                              # seq_len, d_model
    # Deterministic "Linear(d_model, 1)" params (PyTorch weight shape (1, D)).
    w = jax.random.normal(kw, (1, D), dtype=jnp.float32) * 0.1
    b = jax.random.normal(kb, (1,), dtype=jnp.float32) * 0.1

    # B=16           : single-step lane-dense (flat) path.
    # B=5            : B < 8 -> general 3-D path, block equal to full batch dim.
    # B=20 with bt=8 : multi-step flat path with a partial (no-pad) last block.
    for B, bt in ((16, None), (5, None), (20, 8)):
        x = jax.random.normal(jax.random.fold_in(kx, B), (B, T, D),
                              dtype=jnp.float32)
        out = jax.block_until_ready(attention_layer(x, w, b, bt=bt))
        ref = attention_layer_ref(x, w, b)
        assert out.shape == (B, D), (out.shape, B, D)
        # Softmax divide is exact now; the remaining tolerance only covers MXU
        # f32 contraction-pass rounding in the in-kernel matmuls.
        assert jnp.allclose(out, ref, atol=2e-3, rtol=2e-3), f"mismatch at B={B}"

    print("KERNEL_OK")
</pallas_src>

<mosaic_0001>
module attributes {stable_mosaic.version = 11 : i64} {
  func.func @_attn_flat_kernel(%arg0: i32, %arg1: memref<16x256xf32, #tpu.memory_space<vmem>>, %arg2: memref<256x8xf32, #tpu.memory_space<vmem>>, %arg3: memref<8x256xf32, #tpu.memory_space<vmem>>, %arg4: memref<256x32xf32, #tpu.memory_space<vmem>>, %arg5: memref<1x1xf32, #tpu.memory_space<smem>>, %arg6: memref<16x32xf32, #tpu.memory_space<vmem>>) attributes {dimension_semantics = [#tpu.dimension_semantics<parallel>], iteration_bounds = array<i64: 1>, scalar_prefetch = 0 : i64, scratch_operands = 0 : i64, tpu.core_type = #tpu.core_type<tc>, window_params = [{transform_indices = @transform_0, window_bounds = array<i64: 16, 256>}, {pipeline_mode = #tpu.pipeline_mode<synchronous>, transform_indices = @transform_1, window_bounds = array<i64: 256, 8>}, {pipeline_mode = #tpu.pipeline_mode<synchronous>, transform_indices = @transform_2, window_bounds = array<i64: 8, 256>}, {pipeline_mode = #tpu.pipeline_mode<synchronous>, transform_indices = @transform_3, window_bounds = array<i64: 256, 32>}, {transform_indices = @transform_4, window_bounds = array<i64: 1, 1>}, {transform_indices = @transform_5, window_bounds = array<i64: 16, 32>}]} {
    %c0 = arith.constant 0 : index
    %c0_0 = arith.constant 0 : index
    %0 = vector.load %arg1[%c0, %c0_0] : memref<16x256xf32, #tpu.memory_space<vmem>>, vector<16x256xf32>
    %c0_1 = arith.constant 0 : index
    %c0_2 = arith.constant 0 : index
    %1 = memref.load %arg5[%c0_1, %c0_2] : memref<1x1xf32, #tpu.memory_space<smem>>
    %c0_3 = arith.constant 0 : index
    %c0_4 = arith.constant 0 : index
    %2 = vector.load %arg2[%c0_3, %c0_4] : memref<256x8xf32, #tpu.memory_space<vmem>>, vector<256x8xf32>
    %cst = arith.constant dense<0.000000e+00> : vector<16x8xf32>
    %3 = tpu.matmul %0, %2, %cst {dimension_numbers = #tpu.dot_dimension_numbers<[1], [0], [0], [1], [0, 0, 1, 1], [], []>} : vector<16x256xf32>, vector<256x8xf32>, vector<16x8xf32> -> vector<16x8xf32>
    %4 = vector.broadcast %1 : f32 to vector<16x8xf32>
    %5 = arith.addf %3, %4 : vector<16x8xf32>
    %6 = math.tanh %5 : vector<16x8xf32>
    %cst_5 = arith.constant dense<0xFF800000> : vector<16xf32>
    %7 = vector.multi_reduction <maximumf>, %6, %cst_5 [1] : vector<16x8xf32> to vector<16xf32>
    %8 = vector.shape_cast %7 : vector<16xf32> to vector<16x1xf32>
    %9 = vector.broadcast %8 : vector<16x1xf32> to vector<16x8xf32>
    %10 = arith.subf %6, %9 : vector<16x8xf32>
    %11 = math.exp %10 : vector<16x8xf32>
    %cst_6 = arith.constant dense<0.000000e+00> : vector<16xf32>
    %12 = vector.multi_reduction <add>, %11, %cst_6 [1] : vector<16x8xf32> to vector<16xf32>
    %13 = vector.shape_cast %12 : vector<16xf32> to vector<16x1xf32>
    %14 = vector.broadcast %13 : vector<16x1xf32> to vector<16x8xf32>
    %15 = arith.divf %11, %14 : vector<16x8xf32>
    %c0_7 = arith.constant 0 : index
    %c0_8 = arith.constant 0 : index
    %16 = vector.load %arg3[%c0_7, %c0_8] : memref<8x256xf32, #tpu.memory_space<vmem>>, vector<8x256xf32>
    %cst_9 = arith.constant dense<0.000000e+00> : vector<16x256xf32>
    %17 = tpu.matmul %15, %16, %cst_9 {dimension_numbers = #tpu.dot_dimension_numbers<[1], [0], [0], [1], [0, 0, 1, 1], [], []>} : vector<16x8xf32>, vector<8x256xf32>, vector<16x256xf32> -> vector<16x256xf32>
    %18 = arith.mulf %0, %17 : vector<16x256xf32>
    %c0_10 = arith.constant 0 : index
    %c0_11 = arith.constant 0 : index
    %19 = vector.load %arg4[%c0_10, %c0_11] : memref<256x32xf32, #tpu.memory_space<vmem>>, vector<256x32xf32>
    %cst_12 = arith.constant dense<0.000000e+00> : vector<16x32xf32>
    %20 = tpu.matmul %18, %19, %cst_12 {dimension_numbers = #tpu.dot_dimension_numbers<[1], [0], [0], [1], [0, 0, 1, 1], [], []>} : vector<16x256xf32>, vector<256x32xf32>, vector<16x32xf32> -> vector<16x32xf32>
    %c0_13 = arith.constant 0 : index
    %c0_14 = arith.constant 0 : index
    %21 = vector.load %arg6[%c0_13, %c0_14] : memref<16x32xf32, #tpu.memory_space<vmem>>, vector<16x32xf32>
    tpu.vector_store %arg6[%c0_13, %c0_14], %20 {strides = array<i32>} : memref<16x32xf32, #tpu.memory_space<vmem>>, vector<16x32xf32>,
    return
  }
  func.func @transform_0(%arg0: i32) -> (i32, i32) {
    %c0_i32 = arith.constant 0 : i32
    %c0_i32_0 = arith.constant 0 : i32
    return %arg0, %c0_i32 : i32, i32
  }
  func.func @transform_1(%arg0: i32) -> (i32, i32) {
    %c0_i32 = arith.constant 0 : i32
    %c0_i32_0 = arith.constant 0 : i32
    %c0_i32_1 = arith.constant 0 : i32
    return %c0_i32, %c0_i32_0 : i32, i32
  }
  func.func @transform_2(%arg0: i32) -> (i32, i32) {
    %c0_i32 = arith.constant 0 : i32
    %c0_i32_0 = arith.constant 0 : i32
    %c0_i32_1 = arith.constant 0 : i32
    return %c0_i32, %c0_i32_0 : i32, i32
  }
  func.func @transform_3(%arg0: i32) -> (i32, i32) {
    %c0_i32 = arith.constant 0 : i32
    %c0_i32_0 = arith.constant 0 : i32
    %c0_i32_1 = arith.constant 0 : i32
    return %c0_i32, %c0_i32_0 : i32, i32
  }
  func.func @transform_4(%arg0: i32) -> (i32, i32) {
    %c0_i32 = arith.constant 0 : i32
    %c0_i32_0 = arith.constant 0 : i32
    %c0_i32_1 = arith.constant 0 : i32
    return %c0_i32, %c0_i32_0 : i32, i32
  }
  func.func @transform_5(%arg0: i32) -> (i32, i32) {
    %c0_i32 = arith.constant 0 : i32
    %c0_i32_0 = arith.constant 0 : i32
    return %arg0, %c0_i32 : i32, i32
  }
}

</mosaic_0001>

<bundles_post_ra>
// kernel: attention_layer.1
= control target key start
LH: loop header
LB: loop body
LE: loop exit
PB: predicated region body
PF: predicated region fallthrough
CT: control target
= control target key end

     0   :  { %s838_s0 = inlined_call_operand.vmem [shape: f32[16,256], index: 0, kind: input, shape index: {}]   ;;  %s839_s1 = inlined_call_operand.vmem [shape: f32[256,8], index: 1, kind: input, shape index: {}]   ;;  %s840_s2 = inlined_call_operand.vmem [shape: f32[8,256], index: 2, kind: input, shape index: {}]   ;;  %s841_s3 = inlined_call_operand.vmem [shape: f32[256,32], index: 3, kind: input, shape index: {}]   ;;  %s842_s4 = inlined_call_operand.<no memory space> [shape: f32[1,1], index: 4, kind: input, shape index: {}]   ;;  %s843_s5 = inlined_call_operand.hbm [shape: f32[16,32], index: 5, kind: output, shape index: {}]  }
   0x1   :  { %v43_v0 = vld [vmem:[%s839_s1 + $0x80] sm:$0xff]  ;;  %v44_v1 = vld [vmem:[%s839_s1 + $0x88] sm:$0xff]  ;;  %v45_v5 = vld [vmem:[%s839_s1 + $0x90] sm:$0xff] }
   0x2   :  { %v27_v2 = vld [vmem:[%s839_s1] sm:$0xff]  ;;  %v453_v3 = vpack.c.bf16 %v44_v1, %v43_v0  ;;  %v28_v4 = vld [vmem:[%s839_s1 + $0x8] sm:$0xff]  ;;  %v46_v6 = vld [vmem:[%s839_s1 + $0x98] sm:$0xff] }
   0x3   :  { %v455_v7 = vpack.c.bf16 %v28_v4, %v27_v2  ;;  %v457_v8 = vpack.c.bf16 %v46_v6, %v45_v5  ;;  %v29_v9 = vld [vmem:[%s839_s1 + $0x10] sm:$0xff]  ;;  %v30_v10 = vld [vmem:[%s839_s1 + $0x18] sm:$0xff]  ;;  %v47_v11 = vld [vmem:[%s839_s1 + $0xa0] sm:$0xff] }
   0x4   :  { %454 = vmatprep.subr.bf16.mxu0 %v453_v3  ;;  %v48_v12 = vld [vmem:[%s839_s1 + $0xa8] sm:$0xff]  ;;  %v459_v13 = vpack.c.bf16 %v30_v10, %v29_v9  ;;  %v31_v15 = vld [vmem:[%s839_s1 + $0x20] sm:$0xff]  ;;  %v49_v17 = vld [vmem:[%s839_s1 + $0xb0] sm:$0xff] }
   0x5   :  { %456 = vmatpush3.bf16.msra.mxu0 %v455_v7  ;;  %v461_v14 = vpack.c.bf16 %v48_v12, %v47_v11  ;;  %v32_v16 = vld [vmem:[%s839_s1 + $0x28] sm:$0xff]  ;;  %v50_v18 = vld [vmem:[%s839_s1 + $0xb8] sm:$0xff]  ;;  %v33_v21 = vld [vmem:[%s839_s1 + $0x30] sm:$0xff] }
   0x6   :  { %458 = vmatprep.subr.bf16.mxu0 %v457_v8  ;;  %v463_v19 = vpack.c.bf16 %v32_v16, %v31_v15  ;;  %v465_v20 = vpack.c.bf16 %v50_v18, %v49_v17  ;;  %v34_v22 = vld [vmem:[%s839_s1 + $0x38] sm:$0xff]  ;;  %v51_v23 = vld [vmem:[%s839_s1 + $0xc0] sm:$0xff]  ;;  %v52_v24 = vld [vmem:[%s839_s1 + $0xc8] sm:$0xff] }
   0x7   :  { %v648_v25 = vld [vmem:[%s838_s0 + $0x8] sm:$0xff]  ;;  %v467_v26 = vpack.c.bf16 %v34_v22, %v33_v21 }
   0x8   :  { %124 = vmatprep.mubr.f32.mxu0 %v648_v25 }
   0x9   :  { %460 = vmatpush3.bf16.msra.mxu0 %v459_v13 }
   0xa   :  { %462 = vmatprep.subr.bf16.mxu0 %v461_v14 }
   0xd   :  { %464 = vmatpush3.bf16.msra.mxu0 %v463_v19 }
   0xe   :  { %11 = vsyncpa [#allocation4], 0  ;;  %466 = vmatprep.subr.bf16.mxu0 %v465_v20  ;;  %v469_v27 = vpack.c.bf16 %v52_v24, %v51_v23  ;;  %v35_v28 = vld [vmem:[%s839_s1 + $0x40] sm:$0xff]  ;;  %v36_v29 = vld [vmem:[%s839_s1 + $0x48] sm:$0xff]  ;;  %v59_v53 = vstv %s842_s4  ;;  %vm137_vm0 = vcmask 64512   ;;  %v557_v13 = vmov 0.0  }
   0xf   :  { %v53_v30 = vld [vmem:[%s839_s1 + $0xd0] sm:$0xff]  ;;  %v54_v31 = vld [vmem:[%s839_s1 + $0xd8] sm:$0xff]  ;;  %v471_v32 = vpack.c.bf16 %v36_v29, %v35_v28  ;;  %v55_v36 = vld [vmem:[%s839_s1 + $0xe0] sm:$0xff]  ;;  %232 = vmatprep.mubr.f32.mxu1 %v557_v13  ;;  %vm356_vm1 = vcmask 261120  }
  0x10   :  { %v473_v33 = vpack.c.bf16 %v54_v31, %v53_v30  ;;  %v37_v34 = vld [vmem:[%s839_s1 + $0x50] sm:$0xff]  ;;  %v38_v35 = vld [vmem:[%s839_s1 + $0x58] sm:$0xff]  ;;  %v56_v37 = vld [vmem:[%s839_s1 + $0xe8] sm:$0xff] }
  0x11   :  { %468 = vmatpush3.bf16.msra.mxu0 %v467_v26  ;;  %v475_v38 = vpack.c.bf16 %v38_v35, %v37_v34  ;;  %v477_v39 = vpack.c.bf16 %v56_v37, %v55_v36  ;;  %v39_v40 = vld [vmem:[%s839_s1 + $0x60] sm:$0xff]  ;;  %v40_v41 = vld [vmem:[%s839_s1 + $0x68] sm:$0xff]  ;;  %v57_v42 = vld [vmem:[%s839_s1 + $0xf0] sm:$0xff] }
  0x12   :  { %470 = vmatprep.subr.bf16.mxu0 %v469_v27  ;;  %v58_v43 = vld [vmem:[%s839_s1 + $0xf8] sm:$0xff]  ;;  %v479_v44 = vpack.c.bf16 %v40_v41, %v39_v40  ;;  %v41_v46 = vld [vmem:[%s839_s1 + $0x70] sm:$0xff]  ;;  %v696_v49 = vld [vmem:[%s838_s0] sm:$0xff] }
  0x13   :  { %v481_v45 = vpack.c.bf16 %v58_v43, %v57_v42  ;;  %v42_v47 = vld [vmem:[%s839_s1 + $0x78] sm:$0xff]  ;;  %v708_v51 = vld [vmem:[%s838_s0 + $0x10] sm:$0xff]  ;;  %v161_v11 = vld [vmem:[%s840_s2 + $0x8] sm:$0xff] }
  0x14   :  { %v483_v48 = vpack.c.bf16 %v42_v47, %v41_v46  ;;  %v701_v50 = vld [vmem:[%s838_s0 + $0x18] sm:$0xff]  ;;  %v160_v12 = vld [vmem:[%s840_s2] sm:$0xff]  ;;  %168 = vmatprep.subr.mxu1 %v161_v11  ;;  %v266_v15 = vld [vmem:[%s841_s3 + $0x88] sm:$0xff] }
  0x15   :  { %472 = vmatpush3.bf16.msra.mxu0 %v471_v32  ;;  %169 = vmatpush1.msra.mxu1 %v160_v12  ;;  %v265_v14 = vld [vmem:[%s841_s3 + $0x80] sm:$0xff]  ;;  %v250_v20 = vld [vmem:[%s841_s3 + $0x8] sm:$0xff]  ;;  %v267_v21 = vld [vmem:[%s841_s3 + $0x90] sm:$0xff] }
  0x16   :  { %474 = vmatprep.subr.bf16.mxu0 %v473_v33  ;;  %v485_v16 = vpack.c.bf16 %v266_v15, %v265_v14  ;;  %v249_v19 = vld [vmem:[%s841_s3] sm:$0xff]  ;;  %v268_v22 = vld [vmem:[%s841_s3 + $0x98] sm:$0xff]  ;;  %v251_v28 = vld [vmem:[%s841_s3 + $0x10] sm:$0xff] }
  0x17   :  { %v487_v24 = vpack.c.bf16 %v250_v20, %v249_v19  ;;  %v489_v27 = vpack.c.bf16 %v268_v22, %v267_v21  ;;  %v252_v29 = vld [vmem:[%s841_s3 + $0x18] sm:$0xff]  ;;  %v269_v30 = vld [vmem:[%s841_s3 + $0xa0] sm:$0xff]  ;;  %v270_v31 = vld [vmem:[%s841_s3 + $0xa8] sm:$0xff] }
  0x18   :  { %486 = vmatprep.subr.bf16.mxu1 %v485_v16  ;;  %v491_v33 = vpack.c.bf16 %v252_v29, %v251_v28  ;;  %v493_v35 = vpack.c.bf16 %v270_v31, %v269_v30  ;;  %v253_v36 = vld [vmem:[%s841_s3 + $0x20] sm:$0xff]  ;;  %v254_v37 = vld [vmem:[%s841_s3 + $0x28] sm:$0xff]  ;;  %v255_v42 = vld [vmem:[%s841_s3 + $0x30] sm:$0xff] }
  0x19   :  { %476 = vmatpush3.bf16.msra.mxu0 %v475_v38  ;;  %v271_v38 = vld [vmem:[%s841_s3 + $0xb0] sm:$0xff]  ;;  %v495_v40 = vpack.c.bf16 %v254_v37, %v253_v36  ;;  %v256_v43 = vld [vmem:[%s841_s3 + $0x38] sm:$0xff] }
  0x1a   :  { %478 = vmatprep.subr.bf16.mxu0 %v477_v39  ;;  %v272_v39 = vld [vmem:[%s841_s3 + $0xb8] sm:$0xff]  ;;  %v499_v46 = vpack.c.bf16 %v256_v43, %v255_v42 }
  0x1b   :  { %v497_v41 = vpack.c.bf16 %v272_v39, %v271_v38 }
  0x1d   :  { %480 = vmatpush3.bf16.msra.mxu0 %v479_v44  ;;  %v273_v44 = vld [vmem:[%s841_s3 + $0xc0] sm:$0xff] }
  0x1e   :  { %482 = vmatprep.subr.bf16.mxu0 %v481_v45  ;;  %v274_v45 = vld [vmem:[%s841_s3 + $0xc8] sm:$0xff] }
  0x1f   :  { %v501_v47 = vpack.c.bf16 %v274_v45, %v273_v44 }
  0x21   :  { %484 = vmatpush3.bf16.msra.mxu0 %v483_v48  ;;  %v257_v48 = vld [vmem:[%s841_s3 + $0x40] sm:$0xff] }
  0x24   :  { %125 = vmatmul.mubr.f32.vlgmr.msra.gmra.mrb[0].mxu0 %v696_v49 }
  0x25   :  { %129 = vmatprep.mubr.f32.mxu0 %v701_v50 }
  0x28   :  { %130 = vmatmul.mubr.f32.gmra.mrb[2].mxu0 %v708_v51 }
  0xf7   :  { %v409_v52 = vpop.f32.mrb[0].mxu0 }
  0xf8   :  { %v410_v54 = vpop.f32.mrb[1].mxu0 }
  0xf9   :  { %v411_v55 = vadd.f32 %v410_v54, %v409_v52  ;;  %v258_v52 = vld [vmem:[%s841_s3 + $0x48] sm:$0xff]  ;;  %v276_v54 = vld [vmem:[%s841_s3 + $0xd8] sm:$0xff] }
  0xfb   :  { %v127_v56 = vadd.f32 %v411_v55, %v59_v53  ;;  %v412_v57 = vpop.f32.mrb[2].mxu0  ;;  %v503_v55 = vpack.c.bf16 %v258_v52, %v257_v48 }
  0xfc   :  { %v413_v58 = vpop.f32.mrb[3].mxu0 }
  0xfd   :  { %521 = vtanh.f32 %v127_v56  ;;  %v414_v59 = vadd.f32 %v413_v58, %v412_v57  ;;  %v259_v57 = vld [vmem:[%s841_s3 + $0x50] sm:$0xff]  ;;  %v260_v58 = vld [vmem:[%s841_s3 + $0x58] sm:$0xff] }
  0xff   :  { %v132_v60 = vadd.f32 %v414_v59, %v59_v53  ;;  %v275_v53 = vld [vmem:[%s841_s3 + $0xd0] sm:$0xff]  ;;  %v277_v59 = vld [vmem:[%s841_s3 + $0xe0] sm:$0xff] }
 0x100   :  { %v505_v56 = vpack.c.bf16 %v276_v54, %v275_v53 }
 0x101   :  { %523 = vtanh.f32 %v132_v60  ;;  %v278_v60 = vld [vmem:[%s841_s3 + $0xe8] sm:$0xff] }
 0x107   :  { %v522_v61 = vpop.eup %521 }
 0x108   :  { %v138_v62 = vsel %vm137_vm0, %v522_v61, -inf }
 0x109   :  { %139 = vmax.xlane.f32.xlu0 %v138_v62  ;;  %v509_v62 = vpack.c.bf16 %v278_v60, %v277_v59 }
 0x10b   :  { %v524_v63 = vpop.eup %523 }
 0x10c   :  { %v141_v0 = vsel %vm137_vm0, %v524_v63, -inf }
 0x10d   :  { %142 = vmax.xlane.f32.xlu0 %v141_v0  ;;  %v262_v0 = vld [vmem:[%s841_s3 + $0x68] sm:$0xff] }
 0x196   :  { %v140_v1 = vpop.xlane.xlu0 %139 }
 0x197   :  { %v144_v2 = vsub.f32 %v522_v61, %v140_v1  ;;  %v507_v61 = vpack.c.bf16 %v260_v58, %v259_v57 }
 0x199   :  { %v146_v3 = vmul.f32 1.442695, %v144_v2  ;;  %v279_v2 = vld [vmem:[%s841_s3 + $0xf0] sm:$0xff] }
 0x19a   :  { %v143_v4 = vpop.xlane.xlu0 %142 }
 0x19b   :  { %525 = vpow2.f32 %v146_v3  ;;  %v145_v5 = vsub.f32 %v524_v63, %v143_v4  ;;  %v261_v63 = vld [vmem:[%s841_s3 + $0x60] sm:$0xff]  ;;  %v280_v3 = vld [vmem:[%s841_s3 + $0xf8] sm:$0xff] }
 0x19c   :  { %v511_v1 = vpack.c.bf16 %v262_v0, %v261_v63  ;;  %v513_v4 = vpack.c.bf16 %v280_v3, %v279_v2 }
 0x19d   :  { %v148_v6 = vmul.f32 1.442695, %v145_v5  ;;  %v263_v5 = vld [vmem:[%s841_s3 + $0x70] sm:$0xff] }
 0x19f   :  { %527 = vpow2.f32 %v148_v6  ;;  %v264_v6 = vld [vmem:[%s841_s3 + $0x78] sm:$0xff]  ;;  %s558_s3 = smov [#allocation3]  }
 0x1a0   :  { %s364_s23 = sshll.u32 %s558_s3, 4  ;;  %s365_s23 = int_to_ptr.vmem [resolvable:$true] %s364_s23 }
 0x1a1   :  { %s533_s24 = scalar_lea.vmem %s365_s23, 256  ;;  %p538_p1 = scmp.lt.s32.totalorder %s365_s23, %s365_s23 }
 0x1a2   :  { %p534_p0 = scmp.ne.s32.totalorder %s365_s23, %s533_s24  ;;  %p539_p2 = scmp.lt.s32.totalorder %s533_s24, %s533_s24 }
 0x1a4   :  { %p540_p3 = por %p539_p2, %p538_p1 }
 0x1a5   :  { %v526_v7 = vpop.eup %525 }
 0x1a6   :  { %v150_v8 = vsel %vm137_vm0, %v526_v7, 0.0  ;;  %p541_p4 = pnand %p540_p3, %p534_p0 }
 0x1a7   :  { %151 = vadd.xlane.f32.xlu1 %v150_v8 }
 0x1a9   :  { %v528_v9 = vpop.eup %527 }
 0x1aa   :  { %v153_v10 = vsel %vm137_vm0, %v528_v9, 0.0 }
 0x1ab   :  { %154 = vadd.xlane.f32.xlu1 %v153_v10 }
 0x234   :  { %v152_v17 = vpop.xlane.xlu1 %151 }
 0x235   :  { %529 = vrcp.f32 %v152_v17 }
 0x238   :  { %v155_v18 = vpop.xlane.xlu1 %154 }
 0x239   :  { %531 = vrcp.f32 %v155_v18 }
 0x23f   :  { %v530_v23 = vpop.eup %529 }
 0x240   :  { %v157_v26 = vmul.f32 %v530_v23, %v526_v7  ;;  %v515_v7 = vpack.c.bf16 %v264_v6, %v263_v5 }
 0x242   :  { %375 = vmatmul.mubr.msk.f32.vlgmr.msra.gmra.mrb[0].mxu1 %vm137_vm0, %v157_v26 }
 0x243   :  { %v532_v32 = vpop.eup %531  ;;  %238 = vmatprep.mubr.f32.mxu1 %v557_v13  ;;  %488 = vmatpush3.bf16.msra.mxu1 %v487_v24 }
 0x244   :  { %v159_v34 = vmul.f32 %v532_v32, %v528_v9  ;;  %490 = vmatprep.subr.bf16.mxu1 %v489_v27 }
 0x246   :  { %376 = vmatmul.mubr.msk.f32.gmra.mrb[2].mxu1 %vm137_vm0, %v159_v34 }
 0x247   :  { %492 = vmatpush3.bf16.msra.mxu1 %v491_v33 }
 0x248   :  { %494 = vmatprep.subr.bf16.mxu1 %v493_v35 }
 0x24b   :  { %496 = vmatpush3.bf16.msra.mxu1 %v495_v40 }
 0x24c   :  { %498 = vmatprep.subr.bf16.mxu1 %v497_v41 }
 0x24f   :  { %500 = vmatpush3.bf16.msra.mxu1 %v499_v46 }
 0x250   :  { %502 = vmatprep.subr.bf16.mxu1 %v501_v47 }
 0x253   :  { %504 = vmatpush3.bf16.msra.mxu1 %v503_v55 }
 0x254   :  { %506 = vmatprep.subr.bf16.mxu1 %v505_v56 }
 0x257   :  { %508 = vmatpush3.bf16.msra.mxu1 %v507_v61 }
 0x258   :  { %510 = vmatprep.subr.bf16.mxu1 %v509_v62 }
 0x25b   :  { %512 = vmatpush3.bf16.msra.mxu1 %v511_v1 }
 0x25c   :  { %514 = vmatprep.subr.bf16.mxu1 %v513_v4 }
 0x25f   :  { %516 = vmatpush3.bf16.msra.mxu1 %v515_v7 }
 0x315   :  { %v234_v8 = vpop.f32.mrb[0].mxu1 }
 0x316   :  { %v236_v9 = vpop.f32.mrb[1].mxu1  ;;  %v245_v11 = vmul.f32 %v234_v8, %v696_v49 }
 0x317   :  { %v246_v10 = vmul.f32 %v236_v9, %v648_v25 }
 0x319   :  { %v240_v12 = vpop.f32.mrb[2].mxu1  ;;  %345 = vmatprep.mubr.f32.mxu1 %v246_v10 }
 0x31a   :  { %v242_v13 = vpop.f32.mrb[3].mxu1  ;;  %346 = vmatmul.mubr.f32.vlgmr.msra.gmra.mrb[4].mxu1 %v245_v11  ;;  %v247_v15 = vmul.f32 %v240_v12, %v708_v51 }
 0x31b   :  { %v248_v14 = vmul.f32 %v242_v13, %v701_v50 }
 0x31d   :  { %350 = vmatprep.mubr.f32.mxu1 %v248_v14 }
 0x31e   :  { %351 = vmatmul.mubr.f32.gmra.mrb[6].mxu1 %v247_v15 }
 0x3ed   :  { %v447_v16 = vpop.f32.mrb[4].mxu1 }
 0x3ee   :  { %v448_v17 = vpop.f32.mrb[5].mxu1 }
 0x3ef   :  { %v449_v18 = vadd.f32 %v448_v17, %v447_v16 }
 0x3f1   :  { %357 = vst.msk [vmem:[#allocation3] sm:$0xff] %vm356_vm1, %v449_v18  ;;  %v450_v25 = vpop.f32.mrb[6].mxu1 }
 0x3f2   :  { %v451_v19 = vpop.f32.mrb[7].mxu1 }
 0x3f3   :  { %v452_v49 = vadd.f32 %v451_v19, %v450_v25 }
 0x3f5   :  { %358 = vst.msk [vmem:[#allocation3 + $0x8] sm:$0xff] %vm356_vm1, %v452_v49 }
 0x3f6   :  { %544 = shalt.err (!%p541_p4)
}
 0x3f7   :  { %s545_s27 = scalar_lea.hbm %s843_s5, 256 }
 0x3f8   :  { %p546_p5 = scmp.ne.s32.totalorder %s843_s5, %s545_s27  ;;  %p549_p6 = scmp.lt.u32.totalorder %s545_s27, %s843_s5 }
 0x3fa   :  { %p551_p7 = pnand %p549_p6, %p546_p5 }
 0x3fc   :  { %554 = shalt.err (!%p551_p7)
}
 0x3fd   :  { %s559_s7 = smov 128   ;;  %s560_s8 = smov 8  }
 0x3fe   :  { %370 = dma.vmem_to_hbm [thread:$0]  %s365_s23, 256, %s843_s5, [#allocation4], %s559_s7, %s559_s7, %s560_s8  }
 0x3ff   :  { %555 = dma.done.wait [#allocation4], 256  }
 0x400   :  { %556 = vsyncadd [#allocation4], 4294967040 }
 0x401   :  { %374 = vsyncpa [#allocation4], 1 }

</bundles_post_ra>
